<compile_context>
chip_gen: v7x
topology: tpu7x:2x2x1
jax: 0.10.0
libtpu: 0.0.40
codegen_flags: <defaults>
</compile_context>

<pallas_src>
import functools

import jax
import jax.numpy as jnp
from jax import lax
from jax.experimental import pallas as pl
from jax.experimental.pallas import tpu as pltpu

NUM_CLASSES = 5
C_PAD = 128          # class dim padded to one lane width for MXU / loss math
NEG_INF = -1e30      # baked into the loss-path bias for padded class columns
K_MAX = 1024         # feature-axis (K) tile for large input_size


def _round_up(x, m):
    return ((x + m - 1) // m) * m


def _vmem_capacity_bytes():
    """Best-effort physical VMEM query; falls back to the smallest (v7x) size."""
    try:
        cap = getattr(pltpu.get_tpu_info(), "vmem_capacity_bytes", None)
        if cap:
            return int(cap)
    except Exception:
        pass
    return 64 * 1024 * 1024


# ----------------------------- kernels ------------------------------------ #
def _linear_kernel(x_ref, wt_ref, b_ref, out_ref, acc_ref, *, d_total, tk):
    # out = x @ Wt + b ;  K (feature) axis is the last grid dim -> f32 scratch accumulator
    k = pl.program_id(1)
    nk = pl.num_programs(1)

    @pl.when(k == 0)
    def _():
        acc_ref[...] = jnp.zeros_like(acc_ref)

    x = x_ref[...]
    if d_total % tk != 0:                       # static: only traced for ragged K
        col = lax.broadcasted_iota(jnp.int32, x.shape, 1) + k * tk
        x = jnp.where(col < d_total, x, jnp.zeros_like(x))
    acc_ref[...] += jnp.dot(x, wt_ref[...], preferred_element_type=jnp.float32)

    @pl.when(k == nk - 1)
    def _():
        acc = acc_ref[...]
        # narrow (lane-masked) store: only the NUM_CLASSES real columns hit HBM
        out_ref[...] = (acc[:, :NUM_CLASSES] + b_ref[...]).astype(out_ref.dtype)


def _linear_xent_kernel(x_ref, wt_ref, bloss_ref, y_ref, partial_ref, acc_ref,
                        *, batch_size, tb, d_total, tk):
    # fused linear + softmax cross-entropy; per-batch-tile partial SUM.
    i = pl.program_id(0)
    k = pl.program_id(1)
    nk = pl.num_programs(1)

    @pl.when(k == 0)
    def _():
        acc_ref[...] = jnp.zeros_like(acc_ref)

    x = x_ref[...]
    if d_total % tk != 0:                       # static: only traced for ragged K
        col = lax.broadcasted_iota(jnp.int32, x.shape, 1) + k * tk
        x = jnp.where(col < d_total, x, jnp.zeros_like(x))
    acc_ref[...] += jnp.dot(x, wt_ref[...], preferred_element_type=jnp.float32)

    @pl.when(k == nk - 1)
    def _():
        # bias has NEG_INF baked into padded class columns -> no explicit class mask
        logits = acc_ref[...] + bloss_ref[...]                   # (TB, C_PAD) f32
        m = jnp.max(logits, axis=-1, keepdims=True)
        lse = m + jnp.log(jnp.sum(jnp.exp(logits - m), axis=-1, keepdims=True))

        class_ids = lax.broadcasted_iota(jnp.int32, logits.shape, 1)
        y = y_ref[...]                                           # (TB, 1) int32
        picked = jnp.sum(jnp.where(class_ids == y, logits, 0.0),
                         axis=-1, keepdims=True)
        per_example = lse - picked                               # (TB, 1)

        def _write(vals):
            partial_ref[...] = jnp.full(partial_ref.shape, jnp.sum(vals),
                                        dtype=partial_ref.dtype)

        if batch_size % tb != 0:   # static: a ragged last batch tile exists
            last = pl.num_programs(0) - 1

            @pl.when(i == last)    # only the last tile carries out-of-bounds rows
            def _():
                rows = lax.broadcasted_iota(jnp.int32, per_example.shape, 0) + i * tb
                _write(jnp.where(rows < batch_size, per_example, 0.0))

            @pl.when(i != last)
            def _():
                _write(per_example)
        else:
            _write(per_example)


# ----------------------------- wrapper ------------------------------------ #
class TorchModel:
    """JAX/Pallas port of the PyTorch module: Linear(input_size, 5) + CE loss."""

    def __init__(self, input_size, key=jax.random.PRNGKey(0), dtype=jnp.float32):
        self.input_size = int(input_size)
        self.dtype = jnp.dtype(dtype)           # compute dtype for x/W on the MXU
        kw, kb = jax.random.split(key)
        bound = 1.0 / (input_size ** 0.5)
        # Reference f32 parameters; PyTorch Linear layout kept transposed as (in, out).
        self.wt = jax.random.uniform(kw, (input_size, NUM_CLASSES), jnp.float32,
                                     -bound, bound)
        self.b = jax.random.uniform(kb, (1, NUM_CLASSES), jnp.float32, -bound, bound)

        # Feature (K) tiling: full-D block when small, 1024-wide K tiles when large.
        self.tk = self.input_size if self.input_size <= K_MAX else K_MAX
        d_pad = _round_up(self.input_size, self.tk)
        self.nk = d_pad // self.tk

        # Kernel-side weight: pre-transposed, zero-padded, stored in compute dtype.
        self.wt_pad = (jnp.zeros((d_pad, C_PAD), self.dtype)
                       .at[:self.input_size, :NUM_CLASSES]
                       .set(self.wt.astype(self.dtype)))
        # Loss-path bias: NEG_INF in padded class columns (kills them in max / LSE).
        self.b_pad_loss = (jnp.full((1, C_PAD), NEG_INF, jnp.float32)
                           .at[:, :NUM_CLASSES].set(self.b))

        # Per-generation VMEM sizing: 128 MiB (v5e/v6e) -> 96 MiB limit / 48 MiB blocks;
        # 64 MiB (v7x) -> 48 MiB limit / 24 MiB blocks.
        cap = _vmem_capacity_bytes()
        self.vmem_limit_bytes = int(min(96 * 2**20, max(32 * 2**20, cap * 3 // 4)))
        self.block_budget_bytes = self.vmem_limit_bytes // 2

    def _tile_b(self, batch, x_itemsize):
        w_itemsize = self.dtype.itemsize
        fixed = 2 * self.tk * C_PAD * w_itemsize + 4 * C_PAD * 4    # weights + biases
        per_row = (2 * self.tk * x_itemsize       # double-buffered x block
                   + C_PAD * 4                    # f32 accumulator scratch
                   + 2 * NUM_CLASSES * 4)         # double-buffered narrow output
        tb = (self.block_budget_bytes - fixed) // per_row
        tb = max(8, min(1024, (tb // 8) * 8))
        # v7x megacore: keep >= 2 batch tiles whenever the batch allows it.
        tb = min(tb, max(8, _round_up(-(-batch // 2), 8)))
        if batch < tb:          # tiny batch -> single full-extent tile
            tb = batch
        return int(tb)

    def __call__(self, x, y=None):
        B, D = x.shape
        assert D == self.input_size
        TB = self._tile_b(B, x.dtype.itemsize)
        grid = (pl.cdiv(B, TB), self.nk)     # batch tiles ("parallel") x K ("arbitrary")

        x_spec = pl.BlockSpec((TB, self.tk), lambda i, k: (i, k))
        w_spec = pl.BlockSpec((self.tk, C_PAD), lambda i, k: (k, 0))
        cparams = pltpu.CompilerParams(
            dimension_semantics=("parallel", "arbitrary"),
            vmem_limit_bytes=self.vmem_limit_bytes,
        )
        scratch = [pltpu.VMEM((TB, C_PAD), jnp.float32)]

        if y is None:
            return pl.pallas_call(
                functools.partial(_linear_kernel, d_total=D, tk=self.tk),
                out_shape=jax.ShapeDtypeStruct((B, NUM_CLASSES), jnp.float32),
                grid=grid,
                in_specs=[x_spec, w_spec,
                          pl.BlockSpec((1, NUM_CLASSES), lambda i, k: (0, 0))],
                out_specs=pl.BlockSpec((TB, NUM_CLASSES), lambda i, k: (i, 0)),
                scratch_shapes=scratch,
                compiler_params=cparams,
            )(x, self.wt_pad, self.b)

        num_tiles = grid[0]
        y2d = y.astype(jnp.int32).reshape(B, 1)
        partials = pl.pallas_call(
            functools.partial(_linear_xent_kernel, batch_size=B, tb=TB,
                              d_total=D, tk=self.tk),
            out_shape=jax.ShapeDtypeStruct((num_tiles, 8, 128), jnp.float32),
            grid=grid,
            in_specs=[x_spec, w_spec,
                      pl.BlockSpec((1, C_PAD), lambda i, k: (0, 0)),
                      pl.BlockSpec((TB, 1), lambda i, k: (i, 0))],
            out_specs=pl.BlockSpec((1, 8, 128), lambda i, k: (i, 0, 0)),
            scratch_shapes=scratch,
            compiler_params=cparams,
        )(x, self.wt_pad, self.b_pad_loss, y2d)
        return jnp.sum(partials[:, 0, 0]) / B


# ------------------------------- main -------------------------------------- #
def _ref_logits(x, w, b):
    return jnp.dot(x.astype(jnp.float32), w, precision=jax.lax.Precision.HIGHEST) + b


def _ref_loss_from_logits(logits, y):
    m = jnp.max(logits, axis=-1, keepdims=True)
    lse = m + jnp.log(jnp.sum(jnp.exp(logits - m), axis=-1, keepdims=True))
    return jnp.mean(lse[:, 0] - logits[jnp.arange(logits.shape[0]), y])


def _ref_loss(x, y, w, b):
    return _ref_loss_from_logits(_ref_logits(x, w, b), y)


if __name__ == "__main__":
    key = jax.random.PRNGKey(0)
    kx, ky, kp, kx2, ky2 = jax.random.split(key, 5)

    B, D = 8, 32
    x = jax.random.normal(kx, (B, D), jnp.float32)
    y = jax.random.randint(ky, (B,), 0, NUM_CLASSES, jnp.int32)

    model = TorchModel(D, key=kp)                  # f32 path (PyTorch numerics)

    logits = model(x)                              # inference path
    loss = model(x, y)                             # training (loss) path
    jax.block_until_ready(logits)
    jax.block_until_ready(loss)

    assert logits.shape == (B, NUM_CLASSES)
    assert jnp.allclose(logits, _ref_logits(x, model.wt, model.b), atol=5e-3, rtol=5e-3)
    assert jnp.allclose(loss, _ref_loss(x, y, model.wt, model.b), atol=5e-3, rtol=5e-3)

    # ragged batch: exercises the pad-free last tile (clipped writes + row mask)
    B2 = 10
    x2 = jax.random.normal(kx2, (B2, D), jnp.float32)
    y2 = jax.random.randint(ky2, (B2,), 0, NUM_CLASSES, jnp.int32)
    logits2 = model(x2)
    loss2 = model(x2, y2)
    jax.block_until_ready(loss2)
    assert logits2.shape == (B2, NUM_CLASSES)
    assert jnp.allclose(logits2, _ref_logits(x2, model.wt, model.b), atol=5e-3, rtol=5e-3)
    assert jnp.allclose(loss2, _ref_loss(x2, y2, model.wt, model.b), atol=5e-3, rtol=5e-3)

    # bf16 compute path (halves the x / weight HBM stream when inputs are bf16)
    model_bf = TorchModel(D, key=kp, dtype=jnp.bfloat16)
    xb = x.astype(jnp.bfloat16)
    w_bf = model_bf.wt.astype(jnp.bfloat16).astype(jnp.float32)
    ref_logits_bf = _ref_logits(xb, w_bf, model_bf.b)
    logits_bf = model_bf(xb)
    loss_bf = model_bf(xb, y)
    jax.block_until_ready(loss_bf)
    assert jnp.allclose(logits_bf, ref_logits_bf, atol=1e-2, rtol=1e-2)
    assert jnp.allclose(loss_bf, _ref_loss_from_logits(ref_logits_bf, y), atol=1e-2, rtol=1e-2)

    print("KERNEL_OK")
</pallas_src>

<mosaic_0001>
module attributes {stable_mosaic.version = 11 : i64} {
  func.func @_linear_kernel(%arg0: i32, %arg1: i32, %arg2: memref<8x32xf32, #tpu.memory_space<vmem>>, %arg3: memref<32x128xf32, #tpu.memory_space<vmem>>, %arg4: memref<1x5xf32, #tpu.memory_space<vmem>>, %arg5: memref<8x5xf32, #tpu.memory_space<vmem>>, %arg6: memref<8x128xf32, #tpu.memory_space<vmem>>) attributes {dimension_semantics = [#tpu.dimension_semantics<parallel>, #tpu.dimension_semantics<arbitrary>], iteration_bounds = array<i64: 1, 1>, scalar_prefetch = 0 : i64, scratch_operands = 1 : i64, tpu.core_type = #tpu.core_type<tc>, window_params = [{transform_indices = @transform_0, window_bounds = array<i64: 8, 32>}, {transform_indices = @transform_1, window_bounds = array<i64: 32, 128>}, {pipeline_mode = #tpu.pipeline_mode<synchronous>, transform_indices = @transform_2, window_bounds = array<i64: 1, 5>}, {transform_indices = @transform_3, window_bounds = array<i64: 8, 5>}]} {
    %c0_i32 = arith.constant 0 : i32
    %0 = arith.cmpi eq, %arg1, %c0_i32 : i32
    %1 = arith.extui %0 : i1 to i32
    %c0_i32_0 = arith.constant 0 : i32
    %2 = arith.cmpi ne, %1, %c0_i32_0 : i32
    scf.if %2 {
      %cst_10 = arith.constant 0.000000e+00 : f32
      %12 = vector.broadcast %cst_10 : f32 to vector<8x128xf32>
      %c0_11 = arith.constant 0 : index
      %c0_12 = arith.constant 0 : index
      %13 = vector.load %arg6[%c0_11, %c0_12] : memref<8x128xf32, #tpu.memory_space<vmem>>, vector<8x128xf32>
      tpu.vector_store %arg6[%c0_11, %c0_12], %12 {strides = array<i32>} : memref<8x128xf32, #tpu.memory_space<vmem>>, vector<8x128xf32>,
    } else {
    }
    %c0 = arith.constant 0 : index
    %c0_1 = arith.constant 0 : index
    %3 = vector.load %arg2[%c0, %c0_1] : memref<8x32xf32, #tpu.memory_space<vmem>>, vector<8x32xf32>
    %c0_2 = arith.constant 0 : index
    %c0_3 = arith.constant 0 : index
    %4 = vector.load %arg6[%c0_2, %c0_3] : memref<8x128xf32, #tpu.memory_space<vmem>>, vector<8x128xf32>
    %c0_4 = arith.constant 0 : index
    %c0_5 = arith.constant 0 : index
    %5 = vector.load %arg3[%c0_4, %c0_5] : memref<32x128xf32, #tpu.memory_space<vmem>>, vector<32x128xf32>
    %cst = arith.constant dense<0.000000e+00> : vector<8x128xf32>
    %6 = tpu.matmul %3, %5, %cst {dimension_numbers = #tpu.dot_dimension_numbers<[1], [0], [0], [1], [0, 0, 1, 1], [], []>} : vector<8x32xf32>, vector<32x128xf32>, vector<8x128xf32> -> vector<8x128xf32>
    %7 = arith.addf %4, %6 : vector<8x128xf32>
    %c0_6 = arith.constant 0 : index
    %c0_7 = arith.constant 0 : index
    %8 = vector.load %arg6[%c0_6, %c0_7] : memref<8x128xf32, #tpu.memory_space<vmem>>, vector<8x128xf32>
    tpu.vector_store %arg6[%c0_6, %c0_7], %7 {strides = array<i32>} : memref<8x128xf32, #tpu.memory_space<vmem>>, vector<8x128xf32>,
    %c0_i32_8 = arith.constant 0 : i32
    %9 = arith.cmpi eq, %arg1, %c0_i32_8 : i32
    %10 = arith.extui %9 : i1 to i32
    %c0_i32_9 = arith.constant 0 : i32
    %11 = arith.cmpi ne, %10, %c0_i32_9 : i32
    scf.if %11 {
      %c0_10 = arith.constant 0 : index
      %c0_11 = arith.constant 0 : index
      %12 = vector.load %arg6[%c0_10, %c0_11] : memref<8x128xf32, #tpu.memory_space<vmem>>, vector<8x128xf32>
      %13 = vector.extract_strided_slice %12 {offsets = [0, 0], sizes = [8, 5], strides = [1, 1]} : vector<8x128xf32> to vector<8x5xf32>
      %c0_12 = arith.constant 0 : index
      %c0_13 = arith.constant 0 : index
      %14 = vector.load %arg4[%c0_12, %c0_13] : memref<1x5xf32, #tpu.memory_space<vmem>>, vector<1x5xf32>
      %15 = vector.broadcast %14 : vector<1x5xf32> to vector<8x5xf32>
      %16 = arith.addf %13, %15 : vector<8x5xf32>
      %c0_14 = arith.constant 0 : index
      %c0_15 = arith.constant 0 : index
      %17 = vector.load %arg5[%c0_14, %c0_15] : memref<8x5xf32, #tpu.memory_space<vmem>>, vector<8x5xf32>
      tpu.vector_store %arg5[%c0_14, %c0_15], %16 {strides = array<i32>} : memref<8x5xf32, #tpu.memory_space<vmem>>, vector<8x5xf32>,
    } else {
    }
    return
  }
  func.func @transform_0(%arg0: i32, %arg1: i32) -> (i32, i32) {
    %c0_i32 = arith.constant 0 : i32
    return %arg0, %arg1 : i32, i32
  }
  func.func @transform_1(%arg0: i32, %arg1: i32) -> (i32, i32) {
    %c0_i32 = arith.constant 0 : i32
    %c0_i32_0 = arith.constant 0 : i32
    return %arg1, %c0_i32 : i32, i32
  }
  func.func @transform_2(%arg0: i32, %arg1: i32) -> (i32, i32) {
    %c0_i32 = arith.constant 0 : i32
    %c0_i32_0 = arith.constant 0 : i32
    %c0_i32_1 = arith.constant 0 : i32
    return %c0_i32, %c0_i32_0 : i32, i32
  }
  func.func @transform_3(%arg0: i32, %arg1: i32) -> (i32, i32) {
    %c0_i32 = arith.constant 0 : i32
    %c0_i32_0 = arith.constant 0 : i32
    return %arg0, %c0_i32 : i32, i32
  }
}

</mosaic_0001>

<bundles_post_ra>
// kernel: tpu_custom_call.1
= control target key start
LH: loop header
LB: loop body
LE: loop exit
PB: predicated region body
PF: predicated region fallthrough
CT: control target
= control target key end

     0   :  { %8 = vsyncpa [#allocation4], 0  ;;  %s336_s0 = inlined_call_operand.hbm [shape: f32[8,32], index: 0, kind: input, shape index: {}]   ;;  %s337_s1 = inlined_call_operand.hbm [shape: f32[32,128], index: 1, kind: input, shape index: {}]   ;;  %s338_s2 = inlined_call_operand.vmem [shape: f32[1,5], index: 2, kind: input, shape index: {}]   ;;  %s339_s3 = inlined_call_operand.hbm [shape: f32[8,5], index: 3, kind: output, shape index: {}]  }
   0x1   :  { %9 = vsyncpa [#allocation7], 0 }
   0x2   :  { %10 = vsyncpa [#allocation5], 0  ;;  %s262_s12 = smov [#allocation3]   ;;  %s263_s14 = smov [#allocation6]  }
   0x3   :  { %s17_s13 = sshll.u32 %s262_s12, 4  ;;  %s26_s15 = sshll.u32 %s263_s14, 4  ;;  %s18_s13 = int_to_ptr.vmem [resolvable:$true] %s17_s13  ;;  %s290_s15 = int_to_ptr.vmem [resolvable:$true] %s26_s15 }
   0x4   :  { %s190_s18 = scalar_lea.hbm %s336_s0, 128 }
   0x5   :  { %p191_p0 = scmp.ne.s32.totalorder %s336_s0, %s190_s18  ;;  %p194_p1 = scmp.lt.u32.totalorder %s190_s18, %s336_s0 }
   0x7   :  { %p196_p2 = pnand %p194_p1, %p191_p0 }
   0x9   :  { %199 = shalt.err (!%p196_p2)
}
   0xa   :  { %s200_s23 = scalar_lea.vmem %s18_s13, 128  ;;  %p205_p4 = scmp.lt.s32.totalorder %s18_s13, %s18_s13 }
   0xb   :  { %p201_p3 = scmp.ne.s32.totalorder %s18_s13, %s200_s23  ;;  %p206_p5 = scmp.lt.s32.totalorder %s200_s23, %s200_s23 }
   0xd   :  { %p207_p6 = por %p206_p5, %p205_p4 }
   0xf   :  { %p208_p7 = pnand %p207_p6, %p201_p3 }
  0x11   :  { %211 = shalt.err (!%p208_p7)
}
  0x12   :  { %20 = dma.hbm_to_vmem [thread:$0]  %s336_s0, 128, %s18_s13, [#allocation4]  }
  0x13   :  { %s212_s28 = scalar_lea.hbm %s337_s1, 512 }
  0x14   :  { %p213_p8 = scmp.ne.s32.totalorder %s337_s1, %s212_s28  ;;  %p216_p9 = scmp.lt.u32.totalorder %s212_s28, %s337_s1 }
  0x16   :  { %p218_p10 = pnand %p216_p9, %p213_p8 }
  0x18   :  { %221 = shalt.err (!%p218_p10)
}
  0x19   :  { %s222_s6 = scalar_lea.vmem %s290_s15, 512  ;;  %p227_p12 = scmp.lt.s32.totalorder %s290_s15, %s290_s15 }
  0x1a   :  { %p223_p11 = scmp.ne.s32.totalorder %s290_s15, %s222_s6  ;;  %p228_p13 = scmp.lt.s32.totalorder %s222_s6, %s222_s6 }
  0x1c   :  { %p229_p0 = por %p228_p13, %p227_p12 }
  0x1e   :  { %p230_p1 = pnand %p229_p0, %p223_p11 }
  0x20   :  { %233 = shalt.err (!%p230_p1)
}
  0x21   :  { %s264_s0 = smov 128   ;;  %s265_s7 = smov 8  }
  0x22   :  { %32 = dma.hbm_to_vmem [thread:$0]  %s337_s1, 512, %s290_s15, [#allocation7], %s264_s0, %s264_s0, %s265_s7  }
  0x23   :  { %256 = dma.done.wait [#allocation4], 128  }
  0x24   :  { %257 = vsyncadd [#allocation4], 4294967168 }
  0x25   :  { %258 = dma.done.wait [#allocation7], 512  }
  0x26   :  { %259 = vsyncadd [#allocation7], 4294966784  ;;  %v266_v0 = vmov 0.0|0.0   ;;  %vm267_vm0 = vmmov 0   ;;  %v268_v1 = vmov 0.0   ;;  %v48_v2 = vld [vmem:[#allocation6] sm:$0xff] }
  0x27   :  { %176 = vmatprep.subr.bf16.mxu0 %v266_v0  ;;  %173 = vmatprep.mubr.msk.f32.mxu0 %vm267_vm0, %v268_v1  ;;  %v49_v3 = vld [vmem:[#allocation6 + $0x8] sm:$0xff]  ;;  %v50_v4 = vld [vmem:[#allocation6 + $0x10] sm:$0xff]  ;;  %v51_v6 = vld [vmem:[#allocation6 + $0x18] sm:$0xff]  ;;  %vm52_vm1 = vcmask 261120   ;;  %s269_s11 = smov [#allocation8]   ;;  %vm140_vm2 = vcmask 39936  }
  0x28   :  { %v177_v5 = vpack.c.bf16 %v49_v3, %v48_v2  ;;  %v180_v7 = vpack.c.bf16 %v51_v6, %v50_v4  ;;  %v46_v8 = vld [vmem:[#allocation3] sm:$0xff]  ;;  %s148_s12 = sshll.u32 %s269_s11, 4  ;;  %s149_s12 = int_to_ptr.vmem [resolvable:$true] %s148_s12 }
  0x29   :  { %v159_v9 = vld [vmem:[%s338_s2] ss:$0 sm:$0xff]  ;;  %s234_s13 = scalar_lea.vmem %s149_s12, 128  ;;  %p239_p3 = scmp.lt.s32.totalorder %s149_s12, %s149_s12 }
  0x2a   :  { %178 = vmatpush3.bf16.msra.mxu0 %v177_v5  ;;  %p235_p2 = scmp.ne.s32.totalorder %s149_s12, %s234_s13  ;;  %p240_p4 = scmp.lt.s32.totalorder %s234_s13, %s234_s13 }
  0x2b   :  { %179 = vmatprep.subr.bf16.mxu0 %v266_v0 }
  0x2c   :  { %p241_p5 = por %p240_p4, %p239_p3 }
  0x2e   :  { %181 = vmatpush3.bf16.msra.mxu0 %v180_v7  ;;  %p242_p6 = pnand %p241_p5, %p235_p2 }
  0x31   :  { %174 = vmatmul.mubr.msk.f32.vlgmr.msra.gmra.mrb[0].mxu0 %vm52_vm1, %v46_v8 }
 0x104   :  { %v122_v10 = vpop.f32.mrb[0].mxu0 }
 0x105   :  { %v139_v11 = vadd.f32 %v159_v9, %v122_v10  ;;  %v175_v12 = vpop.f32.mrb[1].mxu0 }
 0x107   :  { %141 = vst.msk [vmem:[#allocation8] sm:$0xff] %vm140_vm2, %v139_v11 }
 0x108   :  { %245 = shalt.err (!%p242_p6)
}
 0x109   :  { %s246_s16 = scalar_lea.hbm %s339_s3, 128 }
 0x10a   :  { %p247_p7 = scmp.ne.s32.totalorder %s339_s3, %s246_s16  ;;  %p250_p8 = scmp.lt.u32.totalorder %s246_s16, %s339_s3 }
 0x10c   :  { %p252_p9 = pnand %p250_p8, %p247_p7 }
 0x10e   :  { %255 = shalt.err (!%p252_p9)
}
 0x10f   :  { %151 = dma.vmem_to_hbm [thread:$0]  %s149_s12, 128, %s339_s3, [#allocation5]  }
 0x110   :  { %260 = dma.done.wait [#allocation5], 128  }
 0x111   :  { %261 = vsyncadd [#allocation5], 4294967168 }
 0x112   :  { %155 = vsyncpa [#allocation4], 1 }
 0x113   :  { %156 = vsyncpa [#allocation7], 1 }
 0x114   :  { %157 = vsyncpa [#allocation5], 1 }

</bundles_post_ra>
